<compile_context>
chip_gen: v7x
topology: tpu7x:2x2x1
jax: 0.10.0
libtpu: 0.0.40
codegen_flags: <defaults>
</compile_context>

<pallas_src>
import jax
import jax.numpy as jnp
from jax.experimental import pallas as pl
from jax.experimental.pallas import tpu as pltpu

_HIDDEN = 10


def _mlp_kernel(params_ref, x_ref, o_ref):
    # params_ref: SMEM f32[3*H + 1] = [w1(10) | b1(10) | w2(10) | b2(1)]
    # x_ref / o_ref: lane-dense (block_rows, LANE) f32 VMEM tiles.
    x = x_ref[...]
    acc = jnp.zeros(x.shape, jnp.float32)
    for j in range(_HIDDEN):  # statically unrolled: 10 VPU FMA + relu + FMA
        w1j = params_ref[j]
        b1j = params_ref[_HIDDEN + j]
        w2j = params_ref[2 * _HIDDEN + j]
        acc = acc + jnp.maximum(x * w1j + b1j, 0.0) * w2j
    o_ref[...] = (acc + params_ref[3 * _HIDDEN]).astype(o_ref.dtype)


def quadratic_model_forward(x, w1, b1, w2, b2, *, lane=512, max_block_rows=512,
                            min_pallas_batch=512):
    """Forward pass of QuadraticModel.

    x : (N, 1) f32  (like torch's x.unsqueeze(-1))
    w1: (10, 1), b1: (10,), w2: (1, 10), b2: (1,)   -- PyTorch Linear layout.
    Returns (N, 1) f32.
    """
    n = x.shape[0]
    w1f = jnp.asarray(w1, jnp.float32).reshape(-1)   # (10,)
    b1f = jnp.asarray(b1, jnp.float32).reshape(-1)   # (10,)
    w2f = jnp.asarray(w2, jnp.float32).reshape(-1)   # (10,)
    b2f = jnp.asarray(b2, jnp.float32).reshape(-1)   # (1,)

    if n < min_pallas_batch:
        # Kernel-launch + grid overhead dwarfs the ~30 flops/row; use plain XLA.
        h = jnp.maximum(x * w1f[None, :] + b1f[None, :], 0.0)
        return (h @ w2f[:, None] + b2f).astype(jnp.float32)

    params = jnp.concatenate([w1f, b1f, w2f, b2f])   # (31,) -> SMEM via prefetch

    # Lane-dense slab: pad N up so it tiles as (rows, lane) with rows a
    # multiple of block_rows (itself a multiple of 8 sublanes).
    flat = x.reshape(-1)
    rows = -(-n // lane)
    rows = -(-rows // 8) * 8
    block_rows = min(max_block_rows, rows)
    rows = -(-rows // block_rows) * block_rows
    flat = jnp.pad(flat, (0, rows * lane - n))
    slab = flat.reshape(rows, lane)

    out = pl.pallas_call(
        _mlp_kernel,
        out_shape=jax.ShapeDtypeStruct((rows, lane), jnp.float32),
        grid_spec=pltpu.PrefetchScalarGridSpec(
            num_scalar_prefetch=1,                      # params -> SMEM
            grid=(rows // block_rows,),
            in_specs=[pl.BlockSpec((block_rows, lane),
                                   lambda i, params: (i, 0))],
            out_specs=pl.BlockSpec((block_rows, lane),
                                   lambda i, params: (i, 0)),
        ),
        compiler_params=pltpu.CompilerParams(
            dimension_semantics=("parallel",),          # megacore split on v7x
        ),
    )(params, slab)

    return out.reshape(-1)[:n].reshape(n, 1)


def init_params(key):
    """Deterministic init matching PyTorch Linear default U(-1/sqrt(fan_in), +)."""
    k1, k2, k3, k4 = jax.random.split(key, 4)
    bound1 = 1.0                       # fc1 fan_in = 1
    w1 = jax.random.uniform(k1, (10, 1), jnp.float32, -bound1, bound1)
    b1 = jax.random.uniform(k2, (10,), jnp.float32, -bound1, bound1)
    bound2 = 1.0 / jnp.sqrt(10.0)      # fc2 fan_in = 10
    w2 = jax.random.uniform(k3, (1, 10), jnp.float32, -bound2, bound2)
    b2 = jax.random.uniform(k4, (1,), jnp.float32, -bound2, bound2)
    return w1, b1, w2, b2


def _reference(x, w1, b1, w2, b2):
    return jnp.maximum(x @ w1.T + b1[None, :], 0.0) @ w2.T + b2[None, :]


if __name__ == "__main__":
    key = jax.random.PRNGKey(0)
    kx, kp, kx2 = jax.random.split(key, 3)
    w1, b1, w2, b2 = init_params(kp)

    # Pallas path: lane-dense batch (N, 1) like x.unsqueeze(-1) in torch.
    batch = 8192
    x = jax.random.uniform(kx, (batch, 1), jnp.float32, -2.0, 2.0)
    y = jax.block_until_ready(quadratic_model_forward(x, w1, b1, w2, b2))
    ref = _reference(x, w1, b1, w2, b2)
    assert y.shape == (batch, 1)
    assert jnp.allclose(y, ref, atol=1e-5, rtol=1e-5)

    # Tiny batch goes through the pure-JAX fallback (launching Pallas for ~8
    # rows is pure overhead) but must match the same semantics.
    x_small = jax.random.uniform(kx2, (8, 1), jnp.float32, -2.0, 2.0)
    y_small = jax.block_until_ready(
        quadratic_model_forward(x_small, w1, b1, w2, b2))
    assert jnp.allclose(y_small, _reference(x_small, w1, b1, w2, b2),
                        atol=1e-5, rtol=1e-5)

    print("KERNEL_OK")
</pallas_src>

<mosaic_0001>
module attributes {stable_mosaic.version = 11 : i64} {
  func.func @_mlp_kernel(%arg0: i32, %arg1: memref<31xf32, #tpu.memory_space<smem>>, %arg2: memref<16x512xf32, #tpu.memory_space<vmem>>, %arg3: memref<16x512xf32, #tpu.memory_space<vmem>>) attributes {dimension_semantics = [#tpu.dimension_semantics<parallel>], iteration_bounds = array<i64: 1>, scalar_prefetch = 1 : i64, scratch_operands = 0 : i64, tpu.core_type = #tpu.core_type<tc>, window_params = [{transform_indices = @transform_0, window_bounds = array<i64: 16, 512>}, {transform_indices = @transform_1, window_bounds = array<i64: 16, 512>}]} {
    %c0 = arith.constant 0 : index
    %c0_0 = arith.constant 0 : index
    %0 = vector.load %arg2[%c0, %c0_0] : memref<16x512xf32, #tpu.memory_space<vmem>>, vector<16x512xf32>
    %cst = arith.constant 0.000000e+00 : f32
    %1 = vector.broadcast %cst : f32 to vector<16x512xf32>
    %c0_1 = arith.constant 0 : index
    %2 = memref.load %arg1[%c0_1] : memref<31xf32, #tpu.memory_space<smem>>
    %c10 = arith.constant 10 : index
    %3 = memref.load %arg1[%c10] : memref<31xf32, #tpu.memory_space<smem>>
    %c20 = arith.constant 20 : index
    %4 = memref.load %arg1[%c20] : memref<31xf32, #tpu.memory_space<smem>>
    %5 = vector.broadcast %2 : f32 to vector<16x512xf32>
    %6 = arith.mulf %0, %5 : vector<16x512xf32>
    %7 = vector.broadcast %3 : f32 to vector<16x512xf32>
    %8 = arith.addf %6, %7 : vector<16x512xf32>
    %cst_2 = arith.constant 0.000000e+00 : f32
    %9 = vector.broadcast %cst_2 : f32 to vector<16x512xf32>
    %10 = arith.maximumf %8, %9 : vector<16x512xf32>
    %11 = vector.broadcast %4 : f32 to vector<16x512xf32>
    %12 = arith.mulf %10, %11 : vector<16x512xf32>
    %13 = arith.addf %1, %12 : vector<16x512xf32>
    %c1 = arith.constant 1 : index
    %14 = memref.load %arg1[%c1] : memref<31xf32, #tpu.memory_space<smem>>
    %c11 = arith.constant 11 : index
    %15 = memref.load %arg1[%c11] : memref<31xf32, #tpu.memory_space<smem>>
    %c21 = arith.constant 21 : index
    %16 = memref.load %arg1[%c21] : memref<31xf32, #tpu.memory_space<smem>>
    %17 = vector.broadcast %14 : f32 to vector<16x512xf32>
    %18 = arith.mulf %0, %17 : vector<16x512xf32>
    %19 = vector.broadcast %15 : f32 to vector<16x512xf32>
    %20 = arith.addf %18, %19 : vector<16x512xf32>
    %cst_3 = arith.constant 0.000000e+00 : f32
    %21 = vector.broadcast %cst_3 : f32 to vector<16x512xf32>
    %22 = arith.maximumf %20, %21 : vector<16x512xf32>
    %23 = vector.broadcast %16 : f32 to vector<16x512xf32>
    %24 = arith.mulf %22, %23 : vector<16x512xf32>
    %25 = arith.addf %13, %24 : vector<16x512xf32>
    %c2 = arith.constant 2 : index
    %26 = memref.load %arg1[%c2] : memref<31xf32, #tpu.memory_space<smem>>
    %c12 = arith.constant 12 : index
    %27 = memref.load %arg1[%c12] : memref<31xf32, #tpu.memory_space<smem>>
    %c22 = arith.constant 22 : index
    %28 = memref.load %arg1[%c22] : memref<31xf32, #tpu.memory_space<smem>>
    %29 = vector.broadcast %26 : f32 to vector<16x512xf32>
    %30 = arith.mulf %0, %29 : vector<16x512xf32>
    %31 = vector.broadcast %27 : f32 to vector<16x512xf32>
    %32 = arith.addf %30, %31 : vector<16x512xf32>
    %cst_4 = arith.constant 0.000000e+00 : f32
    %33 = vector.broadcast %cst_4 : f32 to vector<16x512xf32>
    %34 = arith.maximumf %32, %33 : vector<16x512xf32>
    %35 = vector.broadcast %28 : f32 to vector<16x512xf32>
    %36 = arith.mulf %34, %35 : vector<16x512xf32>
    %37 = arith.addf %25, %36 : vector<16x512xf32>
    %c3 = arith.constant 3 : index
    %38 = memref.load %arg1[%c3] : memref<31xf32, #tpu.memory_space<smem>>
    %c13 = arith.constant 13 : index
    %39 = memref.load %arg1[%c13] : memref<31xf32, #tpu.memory_space<smem>>
    %c23 = arith.constant 23 : index
    %40 = memref.load %arg1[%c23] : memref<31xf32, #tpu.memory_space<smem>>
    %41 = vector.broadcast %38 : f32 to vector<16x512xf32>
    %42 = arith.mulf %0, %41 : vector<16x512xf32>
    %43 = vector.broadcast %39 : f32 to vector<16x512xf32>
    %44 = arith.addf %42, %43 : vector<16x512xf32>
    %cst_5 = arith.constant 0.000000e+00 : f32
    %45 = vector.broadcast %cst_5 : f32 to vector<16x512xf32>
    %46 = arith.maximumf %44, %45 : vector<16x512xf32>
    %47 = vector.broadcast %40 : f32 to vector<16x512xf32>
    %48 = arith.mulf %46, %47 : vector<16x512xf32>
    %49 = arith.addf %37, %48 : vector<16x512xf32>
    %c4 = arith.constant 4 : index
    %50 = memref.load %arg1[%c4] : memref<31xf32, #tpu.memory_space<smem>>
    %c14 = arith.constant 14 : index
    %51 = memref.load %arg1[%c14] : memref<31xf32, #tpu.memory_space<smem>>
    %c24 = arith.constant 24 : index
    %52 = memref.load %arg1[%c24] : memref<31xf32, #tpu.memory_space<smem>>
    %53 = vector.broadcast %50 : f32 to vector<16x512xf32>
    %54 = arith.mulf %0, %53 : vector<16x512xf32>
    %55 = vector.broadcast %51 : f32 to vector<16x512xf32>
    %56 = arith.addf %54, %55 : vector<16x512xf32>
    %cst_6 = arith.constant 0.000000e+00 : f32
    %57 = vector.broadcast %cst_6 : f32 to vector<16x512xf32>
    %58 = arith.maximumf %56, %57 : vector<16x512xf32>
    %59 = vector.broadcast %52 : f32 to vector<16x512xf32>
    %60 = arith.mulf %58, %59 : vector<16x512xf32>
    %61 = arith.addf %49, %60 : vector<16x512xf32>
    %c5 = arith.constant 5 : index
    %62 = memref.load %arg1[%c5] : memref<31xf32, #tpu.memory_space<smem>>
    %c15 = arith.constant 15 : index
    %63 = memref.load %arg1[%c15] : memref<31xf32, #tpu.memory_space<smem>>
    %c25 = arith.constant 25 : index
    %64 = memref.load %arg1[%c25] : memref<31xf32, #tpu.memory_space<smem>>
    %65 = vector.broadcast %62 : f32 to vector<16x512xf32>
    %66 = arith.mulf %0, %65 : vector<16x512xf32>
    %67 = vector.broadcast %63 : f32 to vector<16x512xf32>
    %68 = arith.addf %66, %67 : vector<16x512xf32>
    %cst_7 = arith.constant 0.000000e+00 : f32
    %69 = vector.broadcast %cst_7 : f32 to vector<16x512xf32>
    %70 = arith.maximumf %68, %69 : vector<16x512xf32>
    %71 = vector.broadcast %64 : f32 to vector<16x512xf32>
    %72 = arith.mulf %70, %71 : vector<16x512xf32>
    %73 = arith.addf %61, %72 : vector<16x512xf32>
    %c6 = arith.constant 6 : index
    %74 = memref.load %arg1[%c6] : memref<31xf32, #tpu.memory_space<smem>>
    %c16 = arith.constant 16 : index
    %75 = memref.load %arg1[%c16] : memref<31xf32, #tpu.memory_space<smem>>
    %c26 = arith.constant 26 : index
    %76 = memref.load %arg1[%c26] : memref<31xf32, #tpu.memory_space<smem>>
    %77 = vector.broadcast %74 : f32 to vector<16x512xf32>
    %78 = arith.mulf %0, %77 : vector<16x512xf32>
    %79 = vector.broadcast %75 : f32 to vector<16x512xf32>
    %80 = arith.addf %78, %79 : vector<16x512xf32>
    %cst_8 = arith.constant 0.000000e+00 : f32
    %81 = vector.broadcast %cst_8 : f32 to vector<16x512xf32>
    %82 = arith.maximumf %80, %81 : vector<16x512xf32>
    %83 = vector.broadcast %76 : f32 to vector<16x512xf32>
    %84 = arith.mulf %82, %83 : vector<16x512xf32>
    %85 = arith.addf %73, %84 : vector<16x512xf32>
    %c7 = arith.constant 7 : index
    %86 = memref.load %arg1[%c7] : memref<31xf32, #tpu.memory_space<smem>>
    %c17 = arith.constant 17 : index
    %87 = memref.load %arg1[%c17] : memref<31xf32, #tpu.memory_space<smem>>
    %c27 = arith.constant 27 : index
    %88 = memref.load %arg1[%c27] : memref<31xf32, #tpu.memory_space<smem>>
    %89 = vector.broadcast %86 : f32 to vector<16x512xf32>
    %90 = arith.mulf %0, %89 : vector<16x512xf32>
    %91 = vector.broadcast %87 : f32 to vector<16x512xf32>
    %92 = arith.addf %90, %91 : vector<16x512xf32>
    %cst_9 = arith.constant 0.000000e+00 : f32
    %93 = vector.broadcast %cst_9 : f32 to vector<16x512xf32>
    %94 = arith.maximumf %92, %93 : vector<16x512xf32>
    %95 = vector.broadcast %88 : f32 to vector<16x512xf32>
    %96 = arith.mulf %94, %95 : vector<16x512xf32>
    %97 = arith.addf %85, %96 : vector<16x512xf32>
    %c8 = arith.constant 8 : index
    %98 = memref.load %arg1[%c8] : memref<31xf32, #tpu.memory_space<smem>>
    %c18 = arith.constant 18 : index
    %99 = memref.load %arg1[%c18] : memref<31xf32, #tpu.memory_space<smem>>
    %c28 = arith.constant 28 : index
    %100 = memref.load %arg1[%c28] : memref<31xf32, #tpu.memory_space<smem>>
    %101 = vector.broadcast %98 : f32 to vector<16x512xf32>
    %102 = arith.mulf %0, %101 : vector<16x512xf32>
    %103 = vector.broadcast %99 : f32 to vector<16x512xf32>
    %104 = arith.addf %102, %103 : vector<16x512xf32>
    %cst_10 = arith.constant 0.000000e+00 : f32
    %105 = vector.broadcast %cst_10 : f32 to vector<16x512xf32>
    %106 = arith.maximumf %104, %105 : vector<16x512xf32>
    %107 = vector.broadcast %100 : f32 to vector<16x512xf32>
    %108 = arith.mulf %106, %107 : vector<16x512xf32>
    %109 = arith.addf %97, %108 : vector<16x512xf32>
    %c9 = arith.constant 9 : index
    %110 = memref.load %arg1[%c9] : memref<31xf32, #tpu.memory_space<smem>>
    %c19 = arith.constant 19 : index
    %111 = memref.load %arg1[%c19] : memref<31xf32, #tpu.memory_space<smem>>
    %c29 = arith.constant 29 : index
    %112 = memref.load %arg1[%c29] : memref<31xf32, #tpu.memory_space<smem>>
    %113 = vector.broadcast %110 : f32 to vector<16x512xf32>
    %114 = arith.mulf %0, %113 : vector<16x512xf32>
    %115 = vector.broadcast %111 : f32 to vector<16x512xf32>
    %116 = arith.addf %114, %115 : vector<16x512xf32>
    %cst_11 = arith.constant 0.000000e+00 : f32
    %117 = vector.broadcast %cst_11 : f32 to vector<16x512xf32>
    %118 = arith.maximumf %116, %117 : vector<16x512xf32>
    %119 = vector.broadcast %112 : f32 to vector<16x512xf32>
    %120 = arith.mulf %118, %119 : vector<16x512xf32>
    %121 = arith.addf %109, %120 : vector<16x512xf32>
    %c30 = arith.constant 30 : index
    %122 = memref.load %arg1[%c30] : memref<31xf32, #tpu.memory_space<smem>>
    %123 = vector.broadcast %122 : f32 to vector<16x512xf32>
    %124 = arith.addf %121, %123 : vector<16x512xf32>
    %c0_12 = arith.constant 0 : index
    %c0_13 = arith.constant 0 : index
    %125 = vector.load %arg3[%c0_12, %c0_13] : memref<16x512xf32, #tpu.memory_space<vmem>>, vector<16x512xf32>
    tpu.vector_store %arg3[%c0_12, %c0_13], %124 {strides = array<i32>} : memref<16x512xf32, #tpu.memory_space<vmem>>, vector<16x512xf32>,
    return
  }
  func.func @transform_0(%arg0: i32, %arg1: memref<31xf32, #tpu.memory_space<smem>>) -> (i32, i32) {
    %c0_i32 = arith.constant 0 : i32
    %c0_i32_0 = arith.constant 0 : i32
    return %arg0, %c0_i32 : i32, i32
  }
  func.func @transform_1(%arg0: i32, %arg1: memref<31xf32, #tpu.memory_space<smem>>) -> (i32, i32) {
    %c0_i32 = arith.constant 0 : i32
    %c0_i32_0 = arith.constant 0 : i32
    return %arg0, %c0_i32 : i32, i32
  }
}

</mosaic_0001>

<bundles_post_ra>
// kernel: tpu_custom_call.1
= control target key start
LH: loop header
LB: loop body
LE: loop exit
PB: predicated region body
PF: predicated region fallthrough
CT: control target
= control target key end

     0   :  { %s1103_s0 = inlined_call_operand.hbm [shape: f32[31], index: 0, kind: input, shape index: {}]   ;;  %s1104_s1 = inlined_call_operand.hbm [shape: f32[16,512], index: 1, kind: input, shape index: {}]   ;;  %s1105_s2 = inlined_call_operand.hbm [shape: f32[16,512], index: 2, kind: output, shape index: {}]  }
   0x1   :  { %s566_s11 = scalar_lea.hbm %s1103_s0, 16 }
   0x2   :  { %p567_p0 = scmp.ne.s32.totalorder %s1103_s0, %s566_s11  ;;  %p570_p1 = scmp.lt.u32.totalorder %s566_s11, %s1103_s0 }
   0x4   :  { %p572_p2 = pnand %p570_p1, %p567_p0 }
   0x6   :  { %575 = shalt.err (!%p572_p2)  }
   0x7   :  { %s626_s16 = smov [#allocation3]  }
   0x8   :  { %8 = dma.hbm_to_smem %s1103_s0, 16, %s626_s16, [#allocation2] }
   0x9   :  { %620 = dma.done.wait [#allocation2], 16 }
   0xa   :  { %621 = vsyncadd [#allocation2], 4294967280 }
   0xb   :  { %10 = sfence }
   0xc   :  { %11 = vsyncpa [#allocation5], 0 }
   0xd   :  { %12 = vsyncpa [#allocation6], 0  ;;  %s627_s19 = smov [#allocation4]   ;;  %s576_s23 = scalar_lea.hbm %s1104_s1, 1024 }
   0xe   :  { %s18_s20 = sshll.u32 %s627_s19, 4  ;;  %p577_p3 = scmp.ne.s32.totalorder %s1104_s1, %s576_s23  ;;  %s19_s20 = int_to_ptr.vmem [resolvable:$true] %s18_s20 }
   0xf   :  { %p580_p4 = scmp.lt.u32.totalorder %s576_s23, %s1104_s1 }
  0x11   :  { %p582_p5 = pnand %p580_p4, %p577_p3 }
  0x13   :  { %585 = shalt.err (!%p582_p5)
}
  0x14   :  { %s586_s0 = scalar_lea.vmem %s19_s20, 1024  ;;  %p591_p7 = scmp.lt.s32.totalorder %s19_s20, %s19_s20 }
  0x15   :  { %p587_p6 = scmp.ne.s32.totalorder %s19_s20, %s586_s0  ;;  %p592_p8 = scmp.lt.s32.totalorder %s586_s0, %s586_s0 }
  0x17   :  { %p593_p9 = por %p592_p8, %p591_p7 }
  0x19   :  { %p594_p10 = pnand %p593_p9, %p587_p6 }
  0x1b   :  { %597 = shalt.err (!%p594_p10)
}
  0x1c   :  { %s628_s28 = smov 512   ;;  %s629_s29 = smov 32  }
  0x1d   :  { %24 = dma.hbm_to_vmem [thread:$0]  %s1104_s1, 1024, %s19_s20, [#allocation5], %s628_s28, %s628_s28, %s629_s29  }
  0x1e   :  { %622 = dma.done.wait [#allocation5], 1024  }
  0x1f   :  { %623 = vsyncadd [#allocation5], 4294966272  ;;  %s36_s4 = sld [smem:[#allocation3]]  ;;  %s531_s5 = sld [smem:[#allocation3 + $0xa]]  ;;  %v677_v0 = vld [vmem:[#allocation4] sm:$0xff]  ;;  %v687_v3 = vld [vmem:[#allocation4 + $0x8] sm:$0xff] }
  0x20   :  { %s532_s6 = sld [smem:[#allocation3 + $0x14]]  ;;  %s533_s7 = sld [smem:[#allocation3 + $0x1]] }
  0x21   :  { %s534_s8 = sld [smem:[#allocation3 + $0xb]]  ;;  %s535_s9 = sld [smem:[#allocation3 + $0x15]] }
  0x22   :  { %s536_s10 = sld [smem:[#allocation3 + $0x2]]  ;;  %s537_s11 = sld [smem:[#allocation3 + $0xc]] }
  0x23   :  { %s538_s12 = sld [smem:[#allocation3 + $0x16]]  ;;  %s539_s13 = sld [smem:[#allocation3 + $0x3]] }
  0x24   :  { %s673_s14 = sld [smem:[#allocation3 + $0xd]]  ;;  %s675_s15 = sld [smem:[#allocation3 + $0x17]] }
  0x25   :  { %v679_v1 = vstv %s36_s4  ;;  %v681_v2 = vstv %s531_s5  ;;  %s683_s1 = sld [smem:[#allocation3 + $0x4]]  ;;  %s685_s16 = sld [smem:[#allocation3 + $0xe]] }
  0x26   :  { %v40_v4 = vmul.f32 %v679_v1, %v677_v0  ;;  %v691_v5 = vstv %s532_s6  ;;  %v693_v6 = vstv %s533_s7  ;;  %s695_s17 = sld [smem:[#allocation3 + $0x18]]  ;;  %s697_s18 = sld [smem:[#allocation3 + $0x5]]  ;;  %v41_v7 = vmul.f32 %v679_v1, %v687_v3 }
  0x27   :  { %v86_v8 = vmul.f32 %v693_v6, %v677_v0  ;;  %v703_v9 = vstv %s534_s8  ;;  %v705_v10 = vstv %s535_s9  ;;  %s707_s19 = sld [smem:[#allocation3 + $0xf]]  ;;  %s709_s20 = sld [smem:[#allocation3 + $0x19]]  ;;  %v713_v11 = vmul.f32 %v693_v6, %v687_v3 }
  0x28   :  { %v49_v12 = vadd.f32 %v681_v2, %v40_v4  ;;  %v716_v13 = vstv %s536_s10  ;;  %v718_v14 = vstv %s537_s11  ;;  %s720_s21 = sld [smem:[#allocation3 + $0x6]]  ;;  %s722_s22 = sld [smem:[#allocation3 + $0x10]]  ;;  %v725_v15 = vadd.f32 %v681_v2, %v41_v7 }
  0x29   :  { %v95_v16 = vadd.f32 %v703_v9, %v86_v8  ;;  %v132_v17 = vmul.f32 %v716_v13, %v677_v0  ;;  %v730_v18 = vstv %s538_s12  ;;  %v732_v19 = vstv %s539_s13  ;;  %s734_s23 = sld [smem:[#allocation3 + $0x1a]]  ;;  %s736_s24 = sld [smem:[#allocation3 + $0x7]] }
  0x2a   :  { %v57_v20 = vmax.f32 %v49_v12, 0.0  ;;  %v178_v21 = vmul.f32 %v732_v19, %v677_v0  ;;  %v741_v22 = vstv %s673_s14  ;;  %v744_v23 = vstv %s675_s15  ;;  %s746_s25 = sld [smem:[#allocation3 + $0x11]]  ;;  %s748_s26 = sld [smem:[#allocation3 + $0x1b]] }
  0x2b   :  { %v103_v24 = vmax.f32 %v95_v16, 0.0  ;;  %v141_v25 = vadd.f32 %v718_v14, %v132_v17  ;;  %v752_v26 = vstv %s683_s1  ;;  %v755_v27 = vstv %s685_s16  ;;  %s757_s27 = sld [smem:[#allocation3 + $0x8]]  ;;  %s759_s0 = sld [smem:[#allocation3 + $0x12]] }
  0x2c   :  { %v66_v28 = vmul.f32 %v691_v5, %v57_v20  ;;  %v187_v29 = vadd.f32 %v741_v22, %v178_v21  ;;  %v224_v30 = vmul.f32 %v752_v26, %v677_v0  ;;  %v766_v31 = vstv %s695_s17  ;;  %s768_s30 = sld [smem:[#allocation3 + $0x1c]]  ;;  %s777_s3 = sld [smem:[#allocation3 + $0x9]] }
  0x2d   :  { %v112_v32 = vmul.f32 %v705_v10, %v103_v24  ;;  %v149_v33 = vmax.f32 %v141_v25, 0.0  ;;  %v772_v34 = vstv %s697_s18  ;;  %v775_v35 = vstv %s707_s19  ;;  %s779_s4 = sld [smem:[#allocation3 + $0x13]]  ;;  %s794_s5 = sld [smem:[#allocation3 + $0x1d]] }
  0x2e   :  { %v195_v36 = vmax.f32 %v187_v29, 0.0  ;;  %v233_v37 = vadd.f32 %v755_v27, %v224_v30  ;;  %v270_v38 = vmul.f32 %v772_v34, %v677_v0  ;;  %v785_v39 = vstv %s709_s20  ;;  %s796_s6 = sld [smem:[#allocation3 + $0x1e]]  ;;  %s630_s7 = smov [#allocation7]  }
  0x2f   :  { %v120_v40 = vadd.f32 %v112_v32, %v66_v28  ;;  %v158_v41 = vmul.f32 %v730_v18, %v149_v33  ;;  %v789_v42 = vstv %s720_s21  ;;  %v792_v43 = vstv %s722_s22  ;;  %s519_s8 = sshll.u32 %s630_s7, 4  ;;  %s520_s8 = int_to_ptr.vmem [resolvable:$true] %s519_s8 }
  0x30   :  { %v204_v44 = vmul.f32 %v744_v23, %v195_v36  ;;  %v241_v45 = vmax.f32 %v233_v37, 0.0  ;;  %v279_v46 = vadd.f32 %v775_v35, %v270_v38  ;;  %v316_v47 = vmul.f32 %v789_v42, %v677_v0  ;;  %s598_s9 = scalar_lea.vmem %s520_s8, 1024  ;;  %p603_p12 = scmp.lt.s32.totalorder %s520_s8, %s520_s8 }
  0x31   :  { %v166_v48 = vadd.f32 %v158_v41, %v120_v40  ;;  %v803_v49 = vstv %s734_s23  ;;  %v806_v50 = vstv %s736_s24  ;;  %v809_v51 = vstv %s746_s25  ;;  %p599_p11 = scmp.ne.s32.totalorder %s520_s8, %s598_s9  ;;  %p604_p13 = scmp.lt.s32.totalorder %s598_s9, %s598_s9 }
  0x32   :  { %v250_v52 = vmul.f32 %v766_v31, %v241_v45  ;;  %v287_v53 = vmax.f32 %v279_v46, 0.0  ;;  %v325_v54 = vadd.f32 %v792_v43, %v316_v47  ;;  %v362_v55 = vmul.f32 %v806_v50, %v677_v0 }
  0x33   :  { %v212_v56 = vadd.f32 %v204_v44, %v166_v48  ;;  %v816_v57 = vstv %s748_s26  ;;  %v819_v58 = vstv %s757_s27  ;;  %v822_v59 = vstv %s759_s0  ;;  %p605_p0 = por %p604_p13, %p603_p12 }
  0x34   :  { %v296_v60 = vmul.f32 %v785_v39, %v287_v53  ;;  %v333_v61 = vmax.f32 %v325_v54, 0.0  ;;  %v371_v62 = vadd.f32 %v809_v51, %v362_v55  ;;  %v408_v63 = vmul.f32 %v819_v58, %v677_v0 }
  0x35   :  { %v258_v4 = vadd.f32 %v250_v52, %v212_v56  ;;  %v829_v7 = vstv %s768_s30  ;;  %v832_v8 = vstv %s777_s3  ;;  %v835_v12 = vstv %s779_s4  ;;  %p606_p1 = pnand %p605_p0, %p599_p11 }
  0x36   :  { %v342_v16 = vmul.f32 %v803_v49, %v333_v61  ;;  %v379_v17 = vmax.f32 %v371_v62, 0.0  ;;  %v417_v20 = vadd.f32 %v822_v59, %v408_v63  ;;  %v454_v21 = vmul.f32 %v832_v8, %v677_v0 }
  0x37   :  { %v304_v24 = vadd.f32 %v296_v60, %v258_v4  ;;  %v842_v25 = vstv %s794_s5  ;;  %v845_v28 = vstv %s796_s6  ;;  %v58_v29 = vmax.f32 %v725_v15, 0.0 }
  0x38   :  { %v388_v30 = vmul.f32 %v816_v57, %v379_v17  ;;  %v425_v32 = vmax.f32 %v417_v20, 0.0  ;;  %v463_v33 = vadd.f32 %v835_v12, %v454_v21  ;;  %v96_v36 = vadd.f32 %v703_v9, %v713_v11 }
  0x39   :  { %v350_v37 = vadd.f32 %v342_v16, %v304_v24  ;;  %v67_v38 = vmul.f32 %v691_v5, %v58_v29  ;;  %v133_v0 = vmul.f32 %v716_v13, %v687_v3  ;;  %v179_v40 = vmul.f32 %v732_v19, %v687_v3 }
  0x3a   :  { %v434_v41 = vmul.f32 %v829_v7, %v425_v32  ;;  %v471_v15 = vmax.f32 %v463_v33, 0.0  ;;  %v104_v44 = vmax.f32 %v96_v36, 0.0  ;;  %v225_v45 = vmul.f32 %v752_v26, %v687_v3 }
  0x3b   :  { %v396_v46 = vadd.f32 %v388_v30, %v350_v37  ;;  %v142_v47 = vadd.f32 %v718_v14, %v133_v0  ;;  %v188_v11 = vadd.f32 %v741_v22, %v179_v40  ;;  %v271_v48 = vmul.f32 %v772_v34, %v687_v3  ;;  %v30_v30 = vld [vmem:[#allocation4 + $0x10] sm:$0xff] }
  0x3c   :  { %v480_v52 = vmul.f32 %v842_v25, %v471_v15  ;;  %v113_v53 = vmul.f32 %v705_v10, %v104_v44  ;;  %v234_v54 = vadd.f32 %v755_v27, %v225_v45  ;;  %v317_v55 = vmul.f32 %v789_v42, %v687_v3 }
  0x3d   :  { %v442_v56 = vadd.f32 %v434_v41, %v396_v46  ;;  %v150_v60 = vmax.f32 %v142_v47, 0.0  ;;  %v196_v61 = vmax.f32 %v188_v11, 0.0  ;;  %v280_v62 = vadd.f32 %v775_v35, %v271_v48 }
  0x3e   :  { %v121_v63 = vadd.f32 %v113_v53, %v67_v38  ;;  %v242_v4 = vmax.f32 %v234_v54, 0.0  ;;  %v326_v16 = vadd.f32 %v792_v43, %v317_v55  ;;  %v363_v17 = vmul.f32 %v806_v50, %v687_v3 }
  0x3f   :  { %v488_v20 = vadd.f32 %v480_v52, %v442_v56  ;;  %v159_v21 = vmul.f32 %v730_v18, %v150_v60  ;;  %v205_v24 = vmul.f32 %v744_v23, %v196_v61  ;;  %v288_v29 = vmax.f32 %v280_v62, 0.0 }
  0x40   :  { %v251_v32 = vmul.f32 %v766_v31, %v242_v4  ;;  %v334_v33 = vmax.f32 %v326_v16, 0.0  ;;  %v372_v36 = vadd.f32 %v809_v51, %v363_v17  ;;  %v409_v37 = vmul.f32 %v819_v58, %v687_v3 }
  0x41   :  { %v498_v38 = vadd.f32 %v845_v28, %v488_v20  ;;  %v167_v0 = vadd.f32 %v159_v21, %v121_v63  ;;  %v297_v40 = vmul.f32 %v785_v39, %v288_v29  ;;  %v455_v41 = vmul.f32 %v832_v8, %v687_v3 }
  0x42   :  { %v343_v15 = vmul.f32 %v803_v49, %v334_v33  ;;  %v380_v44 = vmax.f32 %v372_v36, 0.0  ;;  %v418_v45 = vadd.f32 %v822_v59, %v409_v37  ;;  %v42_v46 = vmul.f32 %v679_v1, %v30_v30 }
  0x43   :  { %506 = vst [vmem:[#allocation7] sm:$0xff] %v498_v38  ;;  %v213_v47 = vadd.f32 %v205_v24, %v167_v0  ;;  %v464_v11 = vadd.f32 %v835_v12, %v455_v41  ;;  %v88_v48 = vmul.f32 %v693_v6, %v30_v30  ;;  %v134_v52 = vmul.f32 %v716_v13, %v30_v30 }
  0x44   :  { %v389_v53 = vmul.f32 %v816_v57, %v380_v44  ;;  %v426_v54 = vmax.f32 %v418_v45, 0.0  ;;  %v51_v3 = vadd.f32 %v681_v2, %v42_v46  ;;  %v180_v55 = vmul.f32 %v732_v19, %v30_v30 }
  0x45   :  { %v259_v56 = vadd.f32 %v251_v32, %v213_v47  ;;  %v472_v60 = vmax.f32 %v464_v11, 0.0  ;;  %v97_v61 = vadd.f32 %v703_v9, %v88_v48  ;;  %v143_v62 = vadd.f32 %v718_v14, %v134_v52 }
  0x46   :  { %v435_v63 = vmul.f32 %v829_v7, %v426_v54  ;;  %v59_v4 = vmax.f32 %v51_v3, 0.0  ;;  %v189_v16 = vadd.f32 %v741_v22, %v180_v55  ;;  %v226_v17 = vmul.f32 %v752_v26, %v30_v30 }
  0x47   :  { %v305_v20 = vadd.f32 %v297_v40, %v259_v56  ;;  %v481_v21 = vmul.f32 %v842_v25, %v472_v60  ;;  %v105_v24 = vmax.f32 %v97_v61, 0.0  ;;  %v151_v29 = vmax.f32 %v143_v62, 0.0 }
  0x48   :  { %v68_v33 = vmul.f32 %v691_v5, %v59_v4  ;;  %v197_v32 = vmax.f32 %v189_v16, 0.0  ;;  %v235_v36 = vadd.f32 %v755_v27, %v226_v17  ;;  %v272_v37 = vmul.f32 %v772_v34, %v30_v30 }
  0x49   :  { %v351_v38 = vadd.f32 %v343_v15, %v305_v20  ;;  %v114_v0 = vmul.f32 %v705_v10, %v105_v24  ;;  %v160_v41 = vmul.f32 %v730_v18, %v151_v29  ;;  %v318_v44 = vmul.f32 %v789_v42, %v30_v30  ;;  %v31_v15 = vld [vmem:[#allocation4 + $0x18] sm:$0xff] }
  0x4a   :  { %v206_v40 = vmul.f32 %v744_v23, %v197_v32  ;;  %v243_v45 = vmax.f32 %v235_v36, 0.0  ;;  %v281_v46 = vadd.f32 %v775_v35, %v272_v37  ;;  %v364_v47 = vmul.f32 %v806_v50, %v30_v30 }
  0x4b   :  { %v397_v11 = vadd.f32 %v389_v53, %v351_v38  ;;  %v122_v48 = vadd.f32 %v114_v0, %v68_v33  ;;  %v327_v52 = vadd.f32 %v792_v43, %v318_v44  ;;  %v410_v54 = vmul.f32 %v819_v58, %v30_v30 }
  0x4c   :  { %v252_v3 = vmul.f32 %v766_v31, %v243_v45  ;;  %v289_v55 = vmax.f32 %v281_v46, 0.0  ;;  %v373_v56 = vadd.f32 %v809_v51, %v364_v47  ;;  %v456_v60 = vmul.f32 %v832_v8, %v30_v30 }
  0x4d   :  { %v443_v61 = vadd.f32 %v435_v63, %v397_v11  ;;  %v168_v62 = vadd.f32 %v160_v41, %v122_v48  ;;  %v335_v4 = vmax.f32 %v327_v52, 0.0  ;;  %v419_v16 = vadd.f32 %v822_v59, %v410_v54 }
  0x4e   :  { %v298_v53 = vmul.f32 %v785_v39, %v289_v55  ;;  %v381_v17 = vmax.f32 %v373_v56, 0.0  ;;  %v465_v20 = vadd.f32 %v835_v12, %v456_v60  ;;  %v43_v24 = vmul.f32 %v679_v1, %v31_v15 }
  0x4f   :  { %v489_v29 = vadd.f32 %v481_v21, %v443_v61  ;;  %v214_v33 = vadd.f32 %v206_v40, %v168_v62  ;;  %v344_v32 = vmul.f32 %v803_v49, %v335_v4  ;;  %v427_v36 = vmax.f32 %v419_v16, 0.0 }
  0x50   :  { %v390_v37 = vmul.f32 %v816_v57, %v381_v17  ;;  %v473_v30 = vmax.f32 %v465_v20, 0.0  ;;  %v52_v63 = vadd.f32 %v681_v2, %v43_v24  ;;  %v89_v38 = vmul.f32 %v693_v6, %v31_v15 }
  0x51   :  { %v499_v0 = vadd.f32 %v845_v28, %v489_v29  ;;  %v260_v41 = vadd.f32 %v252_v3, %v214_v33  ;;  %v436_v44 = vmul.f32 %v829_v7, %v427_v36  ;;  %v135_v45 = vmul.f32 %v716_v13, %v31_v15 }
  0x52   :  { %v482_v21 = vmul.f32 %v842_v25, %v473_v30  ;;  %v60_v40 = vmax.f32 %v52_v63, 0.0  ;;  %v98_v46 = vadd.f32 %v703_v9, %v89_v38  ;;  %v181_v47 = vmul.f32 %v732_v19, %v31_v15 }
  0x53   :  { %507 = vst [vmem:[#allocation7 + $0x8] sm:$0xff] %v499_v0  ;;  %v306_v11 = vadd.f32 %v298_v53, %v260_v41  ;;  %v144_v48 = vadd.f32 %v718_v14, %v135_v45  ;;  %v227_v52 = vmul.f32 %v752_v26, %v31_v15  ;;  %v273_v54 = vmul.f32 %v772_v34, %v31_v15  ;;  %v32_v41 = vld [vmem:[#allocation4 + $0x20] sm:$0xff] }
  0x54   :  { %v69_v3 = vmul.f32 %v691_v5, %v60_v40  ;;  %v106_v55 = vmax.f32 %v98_v46, 0.0  ;;  %v190_v56 = vadd.f32 %v741_v22, %v181_v47  ;;  %v319_v60 = vmul.f32 %v789_v42, %v31_v15 }
  0x55   :  { %v352_v61 = vadd.f32 %v344_v32, %v306_v11  ;;  %v152_v62 = vmax.f32 %v144_v48, 0.0  ;;  %v236_v4 = vadd.f32 %v755_v27, %v227_v52  ;;  %v282_v16 = vadd.f32 %v775_v35, %v273_v54 }
  0x56   :  { %v115_v53 = vmul.f32 %v705_v10, %v106_v55  ;;  %v198_v17 = vmax.f32 %v190_v56, 0.0  ;;  %v328_v20 = vadd.f32 %v792_v43, %v319_v60  ;;  %v365_v24 = vmul.f32 %v806_v50, %v31_v15 }
  0x57   :  { %v398_v29 = vadd.f32 %v390_v37, %v352_v61  ;;  %v161_v33 = vmul.f32 %v730_v18, %v152_v62  ;;  %v244_v36 = vmax.f32 %v236_v4, 0.0  ;;  %v290_v30 = vmax.f32 %v282_v16, 0.0 }
  0x58   :  { %v123_v63 = vadd.f32 %v115_v53, %v69_v3  ;;  %v207_v32 = vmul.f32 %v744_v23, %v198_v17  ;;  %v336_v38 = vmax.f32 %v328_v20, 0.0  ;;  %v374_v0 = vadd.f32 %v809_v51, %v365_v24 }
  0x59   :  { %v444_v45 = vadd.f32 %v436_v44, %v398_v29  ;;  %v253_v40 = vmul.f32 %v766_v31, %v244_v36  ;;  %v299_v46 = vmul.f32 %v785_v39, %v290_v30  ;;  %v411_v47 = vmul.f32 %v819_v58, %v31_v15 }
  0x5a   :  { %v169_v11 = vadd.f32 %v161_v33, %v123_v63  ;;  %v345_v37 = vmul.f32 %v803_v49, %v336_v38  ;;  %v382_v48 = vmax.f32 %v374_v0, 0.0  ;;  %v457_v52 = vmul.f32 %v832_v8, %v31_v15 }
  0x5b   :  { %v490_v54 = vadd.f32 %v482_v21, %v444_v45  ;;  %v420_v3 = vadd.f32 %v822_v59, %v411_v47  ;;  %v44_v55 = vmul.f32 %v679_v1, %v32_v41  ;;  %v90_v56 = vmul.f32 %v693_v6, %v32_v41 }
  0x5c   :  { %v215_v44 = vadd.f32 %v207_v32, %v169_v11  ;;  %v391_v60 = vmul.f32 %v816_v57, %v382_v48  ;;  %v466_v61 = vadd.f32 %v835_v12, %v457_v52  ;;  %v136_v62 = vmul.f32 %v716_v13, %v32_v41 }
  0x5d   :  { %v500_v4 = vadd.f32 %v845_v28, %v490_v54  ;;  %v428_v16 = vmax.f32 %v420_v3, 0.0  ;;  %v53_v53 = vadd.f32 %v681_v2, %v44_v55  ;;  %v99_v15 = vadd.f32 %v703_v9, %v90_v56 }
  0x5e   :  { %v261_v21 = vadd.f32 %v253_v40, %v215_v44  ;;  %v474_v17 = vmax.f32 %v466_v61, 0.0  ;;  %v145_v20 = vadd.f32 %v718_v14, %v136_v62  ;;  %v182_v24 = vmul.f32 %v732_v19, %v32_v41 }
  0x5f   :  { %508 = vst [vmem:[#allocation7 + $0x10] sm:$0xff] %v500_v4  ;;  %v437_v29 = vmul.f32 %v829_v7, %v428_v16  ;;  %v61_v33 = vmax.f32 %v53_v53, 0.0  ;;  %v107_v36 = vmax.f32 %v99_v15, 0.0  ;;  %v228_v30 = vmul.f32 %v752_v26, %v32_v41  ;;  %v33_v53 = vld [vmem:[#allocation4 + $0x28] sm:$0xff] }
  0x60   :  { %v307_v63 = vadd.f32 %v299_v46, %v261_v21  ;;  %v483_v32 = vmul.f32 %v842_v25, %v474_v17  ;;  %v153_v38 = vmax.f32 %v145_v20, 0.0  ;;  %v191_v0 = vadd.f32 %v741_v22, %v182_v24 }
  0x61   :  { %v70_v45 = vmul.f32 %v691_v5, %v61_v33  ;;  %v116_v40 = vmul.f32 %v705_v10, %v107_v36  ;;  %v237_v47 = vadd.f32 %v755_v27, %v228_v30  ;;  %v274_v11 = vmul.f32 %v772_v34, %v32_v41 }
  0x62   :  { %v353_v48 = vadd.f32 %v345_v37, %v307_v63  ;;  %v162_v52 = vmul.f32 %v730_v18, %v153_v38  ;;  %v199_v54 = vmax.f32 %v191_v0, 0.0  ;;  %v320_v3 = vmul.f32 %v789_v42, %v32_v41 }
  0x63   :  { %v124_v46 = vadd.f32 %v116_v40, %v70_v45  ;;  %v245_v55 = vmax.f32 %v237_v47, 0.0  ;;  %v283_v56 = vadd.f32 %v775_v35, %v274_v11  ;;  %v366_v44 = vmul.f32 %v806_v50, %v32_v41 }
  0x64   :  { %v399_v61 = vadd.f32 %v391_v60, %v353_v48  ;;  %v208_v62 = vmul.f32 %v744_v23, %v199_v54  ;;  %v329_v4 = vadd.f32 %v792_v43, %v320_v3  ;;  %v412_v16 = vmul.f32 %v819_v58, %v32_v41 }
  0x65   :  { %v170_v37 = vadd.f32 %v162_v52, %v124_v46  ;;  %v254_v15 = vmul.f32 %v766_v31, %v245_v55  ;;  %v291_v21 = vmax.f32 %v283_v56, 0.0  ;;  %v375_v17 = vadd.f32 %v809_v51, %v366_v44 }
  0x66   :  { %v445_v20 = vadd.f32 %v437_v29, %v399_v61  ;;  %v337_v24 = vmax.f32 %v329_v4, 0.0  ;;  %v421_v33 = vadd.f32 %v822_v59, %v412_v16  ;;  %v458_v36 = vmul.f32 %v832_v8, %v32_v41 }
  0x67   :  { %v216_v60 = vadd.f32 %v208_v62, %v170_v37  ;;  %v300_v30 = vmul.f32 %v785_v39, %v291_v21  ;;  %v383_v63 = vmax.f32 %v375_v17, 0.0  ;;  %v45_v38 = vmul.f32 %v679_v1, %v33_v53 }
  0x68   :  { %v491_v0 = vadd.f32 %v483_v32, %v445_v20  ;;  %v346_v45 = vmul.f32 %v803_v49, %v337_v24  ;;  %v429_v40 = vmax.f32 %v421_v33, 0.0  ;;  %v467_v47 = vadd.f32 %v835_v12, %v458_v36 }
  0x69   :  { %v262_v11 = vadd.f32 %v254_v15, %v216_v60  ;;  %v392_v29 = vmul.f32 %v816_v57, %v383_v63  ;;  %v54_v48 = vadd.f32 %v681_v2, %v45_v38  ;;  %v91_v52 = vmul.f32 %v693_v6, %v33_v53 }
  0x6a   :  { %v501_v41 = vadd.f32 %v845_v28, %v491_v0  ;;  %v438_v54 = vmul.f32 %v829_v7, %v429_v40  ;;  %v475_v3 = vmax.f32 %v467_v47, 0.0  ;;  %v137_v46 = vmul.f32 %v716_v13, %v33_v53 }
  0x6b   :  { %v308_v32 = vadd.f32 %v300_v30, %v262_v11  ;;  %v62_v55 = vmax.f32 %v54_v48, 0.0  ;;  %v100_v56 = vadd.f32 %v703_v9, %v91_v52  ;;  %v183_v44 = vmul.f32 %v732_v19, %v33_v53 }
  0x6c   :  { %509 = vst [vmem:[#allocation7 + $0x18] sm:$0xff] %v501_v41  ;;  %v484_v61 = vmul.f32 %v842_v25, %v475_v3  ;;  %v146_v62 = vadd.f32 %v718_v14, %v137_v46  ;;  %v229_v4 = vmul.f32 %v752_v26, %v33_v53  ;;  %v275_v16 = vmul.f32 %v772_v34, %v33_v53  ;;  %v34_v3 = vld [vmem:[#allocation4 + $0x30] sm:$0xff] }
  0x6d   :  { %v354_v37 = vadd.f32 %v346_v45, %v308_v32  ;;  %v71_v15 = vmul.f32 %v691_v5, %v62_v55  ;;  %v108_v21 = vmax.f32 %v100_v56, 0.0  ;;  %v192_v17 = vadd.f32 %v741_v22, %v183_v44 }
  0x6e   :  { %v154_v20 = vmax.f32 %v146_v62, 0.0  ;;  %v238_v24 = vadd.f32 %v755_v27, %v229_v4  ;;  %v284_v33 = vadd.f32 %v775_v35, %v275_v16  ;;  %v321_v36 = vmul.f32 %v789_v42, %v33_v53 }
  0x6f   :  { %v400_v60 = vadd.f32 %v392_v29, %v354_v37  ;;  %v117_v30 = vmul.f32 %v705_v10, %v108_v21  ;;  %v200_v63 = vmax.f32 %v192_v17, 0.0  ;;  %v367_v38 = vmul.f32 %v806_v50, %v33_v53 }
  0x70   :  { %v163_v0 = vmul.f32 %v730_v18, %v154_v20  ;;  %v246_v45 = vmax.f32 %v238_v24, 0.0  ;;  %v292_v40 = vmax.f32 %v284_v33, 0.0  ;;  %v330_v47 = vadd.f32 %v792_v43, %v321_v36 }
  0x71   :  { %v446_v11 = vadd.f32 %v438_v54, %v400_v60  ;;  %v125_v48 = vadd.f32 %v117_v30, %v71_v15  ;;  %v209_v52 = vmul.f32 %v744_v23, %v200_v63  ;;  %v376_v41 = vadd.f32 %v809_v51, %v367_v38 }
  0x72   :  { %v255_v29 = vmul.f32 %v766_v31, %v246_v45  ;;  %v301_v46 = vmul.f32 %v785_v39, %v292_v40  ;;  %v338_v32 = vmax.f32 %v330_v47, 0.0  ;;  %v413_v55 = vmul.f32 %v819_v58, %v33_v53 }
  0x73   :  { %v492_v56 = vadd.f32 %v484_v61, %v446_v11  ;;  %v171_v44 = vadd.f32 %v163_v0, %v125_v48  ;;  %v384_v62 = vmax.f32 %v376_v41, 0.0  ;;  %v459_v4 = vmul.f32 %v832_v8, %v33_v53 }
  0x74   :  { %v347_v54 = vmul.f32 %v803_v49, %v338_v32  ;;  %v422_v16 = vadd.f32 %v822_v59, %v413_v55  ;;  %v46_v37 = vmul.f32 %v679_v1, %v34_v3  ;;  %v92_v15 = vmul.f32 %v693_v6, %v34_v3 }
  0x75   :  { %v502_v21 = vadd.f32 %v845_v28, %v492_v56  ;;  %v217_v17 = vadd.f32 %v209_v52, %v171_v44  ;;  %v393_v20 = vmul.f32 %v816_v57, %v384_v62  ;;  %v468_v24 = vadd.f32 %v835_v12, %v459_v4 }
  0x76   :  { %v430_v61 = vmax.f32 %v422_v16, 0.0  ;;  %v55_v33 = vadd.f32 %v681_v2, %v46_v37  ;;  %v101_v53 = vadd.f32 %v703_v9, %v92_v15  ;;  %v138_v36 = vmul.f32 %v716_v13, %v34_v3 }
  0x77   :  { %510 = vst [vmem:[#allocation7 + $0x20] sm:$0xff] %v502_v21  ;;  %v263_v60 = vadd.f32 %v255_v29, %v217_v17  ;;  %v476_v30 = vmax.f32 %v468_v24, 0.0  ;;  %v184_v63 = vmul.f32 %v732_v19, %v34_v3  ;;  %v230_v38 = vmul.f32 %v752_v26, %v34_v3  ;;  %v1030_v17 = vld [vmem:[#allocation4 + $0x38] sm:$0xff] }
  0x78   :  { %v439_v0 = vmul.f32 %v829_v7, %v430_v61  ;;  %v63_v45 = vmax.f32 %v55_v33, 0.0  ;;  %v109_v40 = vmax.f32 %v101_v53, 0.0  ;;  %v147_v47 = vadd.f32 %v718_v14, %v138_v36 }
  0x79   :  { %v309_v11 = vadd.f32 %v301_v46, %v263_v60  ;;  %v485_v48 = vmul.f32 %v842_v25, %v476_v30  ;;  %v193_v52 = vadd.f32 %v741_v22, %v184_v63  ;;  %v239_v41 = vadd.f32 %v755_v27, %v230_v38 }
  0x7a   :  { %v72_v29 = vmul.f32 %v691_v5, %v63_v45  ;;  %v118_v32 = vmul.f32 %v705_v10, %v109_v40  ;;  %v155_v55 = vmax.f32 %v147_v47, 0.0  ;;  %v276_v56 = vmul.f32 %v772_v34, %v34_v3 }
  0x7b   :  { %v355_v44 = vadd.f32 %v347_v54, %v309_v11  ;;  %v201_v62 = vmax.f32 %v193_v52, 0.0  ;;  %v247_v4 = vmax.f32 %v239_v41, 0.0  ;;  %v322_v16 = vmul.f32 %v789_v42, %v34_v3 }
  0x7c   :  { %v126_v37 = vadd.f32 %v118_v32, %v72_v29  ;;  %v164_v46 = vmul.f32 %v730_v18, %v155_v55  ;;  %v285_v15 = vadd.f32 %v775_v35, %v276_v56  ;;  %v368_v21 = vmul.f32 %v806_v50, %v34_v3 }
  0x7d   :  { %v401_v24 = vadd.f32 %v393_v20, %v355_v44  ;;  %v210_v61 = vmul.f32 %v744_v23, %v201_v62  ;;  %v256_v33 = vmul.f32 %v766_v31, %v247_v4  ;;  %v331_v54 = vadd.f32 %v792_v43, %v322_v16 }
  0x7e   :  { %v172_v53 = vadd.f32 %v164_v46, %v126_v37  ;;  %v293_v36 = vmax.f32 %v285_v15, 0.0  ;;  %v377_v60 = vadd.f32 %v809_v51, %v368_v21  ;;  %v414_v30 = vmul.f32 %v819_v58, %v34_v3 }
  0x7f   :  { %v447_v63 = vadd.f32 %v439_v0, %v401_v24  ;;  %v339_v38 = vmax.f32 %v331_v54, 0.0  ;;  %v460_v45 = vmul.f32 %v832_v8, %v34_v3  ;;  %v47_v40 = vmul.f32 %v679_v1, %v1030_v17 }
  0x80   :  { %v218_v20 = vadd.f32 %v210_v61, %v172_v53  ;;  %v302_v47 = vmul.f32 %v785_v39, %v293_v36  ;;  %v385_v11 = vmax.f32 %v377_v60, 0.0  ;;  %v423_v52 = vadd.f32 %v822_v59, %v414_v30 }
  0x81   :  { %v493_v41 = vadd.f32 %v485_v48, %v447_v63  ;;  %v348_v29 = vmul.f32 %v803_v49, %v339_v38  ;;  %v469_v32 = vadd.f32 %v835_v12, %v460_v45  ;;  %v56_v55 = vadd.f32 %v681_v2, %v47_v40 }
  0x82   :  { %v264_v0 = vadd.f32 %v256_v33, %v218_v20  ;;  %v394_v56 = vmul.f32 %v816_v57, %v385_v11  ;;  %v431_v3 = vmax.f32 %v423_v52, 0.0  ;;  %v93_v1 = vmul.f32 %v693_v6, %v1030_v17 }
  0x83   :  { %v503_v44 = vadd.f32 %v845_v28, %v493_v41  ;;  %v477_v62 = vmax.f32 %v469_v32, 0.0  ;;  %v64_v4 = vmax.f32 %v56_v55, 0.0  ;;  %v139_v48 = vmul.f32 %v716_v13, %v1030_v17 }
  0x84   :  { %v310_v16 = vadd.f32 %v302_v47, %v264_v0  ;;  %v440_v37 = vmul.f32 %v829_v7, %v431_v3  ;;  %v102_v46 = vadd.f32 %v703_v9, %v93_v1  ;;  %v185_v2 = vmul.f32 %v732_v19, %v1030_v17 }
  0x85   :  { %511 = vst [vmem:[#allocation7 + $0x28] sm:$0xff] %v503_v44  ;;  %v486_v15 = vmul.f32 %v842_v25, %v477_v62  ;;  %v73_v6 = vmul.f32 %v691_v5, %v64_v4  ;;  %v148_v21 = vadd.f32 %v718_v14, %v139_v48  ;;  %v231_v24 = vmul.f32 %v752_v26, %v1030_v17 }
  0x86   :  { %v356_v61 = vadd.f32 %v348_v29, %v310_v16  ;;  %v110_v13 = vmax.f32 %v102_v46, 0.0  ;;  %v194_v33 = vadd.f32 %v741_v22, %v185_v2  ;;  %v277_v9 = vmul.f32 %v772_v34, %v1030_v17 }
  0x87   :  { %v156_v54 = vmax.f32 %v148_v21, 0.0  ;;  %v240_v19 = vadd.f32 %v755_v27, %v231_v24  ;;  %v323_v53 = vmul.f32 %v789_v42, %v1030_v17  ;;  %v369_v5 = vmul.f32 %v806_v50, %v1030_v17 }
  0x88   :  { %v402_v14 = vadd.f32 %v394_v56, %v356_v61  ;;  %v119_v36 = vmul.f32 %v705_v10, %v110_v13  ;;  %v202_v26 = vmax.f32 %v194_v33, 0.0  ;;  %v286_v60 = vadd.f32 %v775_v35, %v277_v9 }
  0x89   :  { %v165_v22 = vmul.f32 %v730_v18, %v156_v54  ;;  %v248_v30 = vmax.f32 %v240_v19, 0.0  ;;  %v332_v34 = vadd.f32 %v792_v43, %v323_v53  ;;  %v378_v63 = vadd.f32 %v809_v51, %v369_v5 }
  0x8a   :  { %v448_v27 = vadd.f32 %v440_v37, %v402_v14  ;;  %v127_v38 = vadd.f32 %v119_v36, %v73_v6  ;;  %v211_v42 = vmul.f32 %v744_v23, %v202_v26  ;;  %v294_v45 = vmax.f32 %v286_v60, 0.0 }
  0x8b   :  { %v257_v50 = vmul.f32 %v766_v31, %v248_v30  ;;  %v415_v10 = vmul.f32 %v819_v58, %v1030_v17  ;;  %v340_v35 = vmax.f32 %v332_v34, 0.0  ;;  %v461_v18 = vmul.f32 %v832_v8, %v1030_v17 }
  0x8c   :  { %v494_v40 = vadd.f32 %v486_v15, %v448_v27  ;;  %v173_v20 = vadd.f32 %v165_v22, %v127_v38  ;;  %v386_v47 = vmax.f32 %v378_v63, 0.0  ;;  %v303_v23 = vmul.f32 %v785_v39, %v294_v45 }
  0x8d   :  { %v424_v43 = vadd.f32 %v822_v59, %v415_v10  ;;  %v470_v52 = vadd.f32 %v835_v12, %v461_v18  ;;  %v349_v58 = vmul.f32 %v803_v49, %v340_v35 }
  0x8e   :  { %v504_v51 = vadd.f32 %v845_v28, %v494_v40  ;;  %v219_v11 = vadd.f32 %v211_v42, %v173_v20  ;;  %v395_v32 = vmul.f32 %v816_v57, %v386_v47 }
  0x8f   :  { %v432_v41 = vmax.f32 %v424_v43, 0.0  ;;  %v478_v55 = vmax.f32 %v470_v52, 0.0 }
  0x90   :  { %512 = vst [vmem:[#allocation7 + $0x30] sm:$0xff] %v504_v51  ;;  %v265_v31 = vadd.f32 %v257_v50, %v219_v11 }
  0x91   :  { %v441_v17 = vmul.f32 %v829_v7, %v432_v41  ;;  %v487_v0 = vmul.f32 %v842_v25, %v478_v55 }
  0x92   :  { %v311_v29 = vadd.f32 %v303_v23, %v265_v31 }
  0x94   :  { %v357_v8 = vadd.f32 %v349_v58, %v311_v29 }
  0x96   :  { %v403_v59 = vadd.f32 %v395_v32, %v357_v8 }
  0x98   :  { %v449_v56 = vadd.f32 %v441_v17, %v403_v59 }
  0x9a   :  { %v495_v39 = vadd.f32 %v487_v0, %v449_v56 }
  0x9c   :  { %v505_v12 = vadd.f32 %v845_v28, %v495_v39 }
  0x9e   :  { %513 = vst [vmem:[#allocation7 + $0x38] sm:$0xff] %v505_v12 }
  0x9f   :  { %609 = shalt.err (!%p606_p1)
}
  0xa0   :  { %s610_s12 = scalar_lea.hbm %s1105_s2, 1024 }
  0xa1   :  { %p611_p2 = scmp.ne.s32.totalorder %s1105_s2, %s610_s12  ;;  %p614_p3 = scmp.lt.u32.totalorder %s610_s12, %s1105_s2 }
  0xa3   :  { %p616_p4 = pnand %p614_p3, %p611_p2 }
  0xa5   :  { %619 = shalt.err (!%p616_p4)
}
  0xa6   :  { %525 = dma.vmem_to_hbm [thread:$0]  %s520_s8, 1024, %s1105_s2, [#allocation6], %s628_s28, %s628_s28, %s629_s29  }
  0xa7   :  { %624 = dma.done.wait [#allocation6], 1024  }
  0xa8   :  { %625 = vsyncadd [#allocation6], 4294966272 }
  0xa9   :  { %529 = vsyncpa [#allocation5], 1 }
  0xaa   :  { %530 = vsyncpa [#allocation6], 1 }

</bundles_post_ra>
